<compile_context>
chip_gen: v6e
topology: v6e:2x2x1
jax: 0.10.0
libtpu: 0.0.40
codegen_flags: <defaults>
</compile_context>

<pallas_src>
import numpy as np
import jax
import jax.numpy as jnp
from jax.experimental import pallas as pl
from jax.experimental.pallas import tpu as pltpu

DIM = 7              # supported dim of the module variant with fc1 = Linear(18, 2)
KW = 3               # conv kernel width
L1 = DIM - KW + 1    # = 5  (output width of conv1)
L2 = L1 - KW + 1     # = 3  (output width of conv2)
FEAT = 32            # padded feature width used for every intermediate (>= 6*L1)


# --------------------------------------------------------------------------- #
# Kernel: one batch tile, 4 dense matmuls, fully resident in VMEM.
# --------------------------------------------------------------------------- #
def cnn_kernel(x_ref, w_ref, b_ref, out_ref):
    """x_ref   : (TILE_B, DIM)       f32
       w_ref   : (4, FEAT, FEAT)     f32  packed banded weights (W1..W4)
       b_ref   : (4, 1, FEAT)        f32  packed (tiled) biases
       out_ref : (TILE_B, 2)         f32
    """
    x = x_ref[...]                                  # (TB, DIM)

    w1 = w_ref[0][:DIM, :]                          # (DIM, FEAT)  banded conv1
    w2 = w_ref[1]                                   # (FEAT, FEAT) banded conv2
    w3 = w_ref[2]                                   # (FEAT, FEAT) fc1
    w4 = w_ref[3]                                   # (FEAT, FEAT) fc2

    # conv1 + ReLU   (dropout: identity in eval mode)
    y = jnp.dot(x, w1, preferred_element_type=jnp.float32) + b_ref[0]
    y = jnp.maximum(y, 0.0)
    # conv2 + ReLU
    y = jnp.dot(y, w2, preferred_element_type=jnp.float32) + b_ref[1]
    y = jnp.maximum(y, 0.0)
    # flatten (already baked into the banded layout) + fc1 + ReLU
    y = jnp.dot(y, w3, preferred_element_type=jnp.float32) + b_ref[2]
    y = jnp.maximum(y, 0.0)
    # fc2
    y = jnp.dot(y, w4, preferred_element_type=jnp.float32) + b_ref[3]

    out_ref[...] = y[:, :2]


# --------------------------------------------------------------------------- #
# Wrapper: build banded weight slabs, tile the batch, call the kernel.
# --------------------------------------------------------------------------- #
def build_packed_params(params):
    """Pack PyTorch-layout parameters into (4, FEAT, FEAT) + (4, 1, FEAT) slabs."""
    w1 = np.asarray(params["conv1_w"], np.float32).reshape(6, KW)     # [co, k]
    b1 = np.asarray(params["conv1_b"], np.float32)                    # (6,)
    w2 = np.asarray(params["conv2_w"], np.float32)[:, :, 0, :]        # [co, ci, k]
    b2 = np.asarray(params["conv2_b"], np.float32)                    # (6,)
    wfc1 = np.asarray(params["fc1_w"], np.float32)                    # (2, 6*L2)
    bfc1 = np.asarray(params["fc1_b"], np.float32)                    # (2,)
    wfc2 = np.asarray(params["fc2_w"], np.float32)                    # (2, 2)
    bfc2 = np.asarray(params["fc2_b"], np.float32)                    # (2,)

    w_slab = np.zeros((4, FEAT, FEAT), np.float32)
    b_slab = np.zeros((4, 1, FEAT), np.float32)

    # Stage 1: conv1 -> y1[:, c*L1 + j] = sum_k x[:, j+k] * w1[c, k] + b1[c]
    for c in range(6):
        for j in range(L1):
            for k in range(KW):
                w_slab[0, j + k, c * L1 + j] = w1[c, k]
        b_slab[0, 0, c * L1:(c + 1) * L1] = b1[c]

    # Stage 2: conv2 -> y2[:, co*L2 + j] = sum_{ci,k} y1[:, ci*L1 + j + k] * w2[co, ci, k] + b2[co]
    for co in range(6):
        for j in range(L2):
            for ci in range(6):
                for k in range(KW):
                    w_slab[1, ci * L1 + j + k, co * L2 + j] = w2[co, ci, k]
        b_slab[1, 0, co * L2:(co + 1) * L2] = b2[co]

    # Stage 3: fc1 (PyTorch flatten index is c*L2 + j, which matches y2 layout)
    w_slab[2, :6 * L2, :2] = wfc1.T
    b_slab[2, 0, :2] = bfc1

    # Stage 4: fc2
    w_slab[3, :2, :2] = wfc2.T
    b_slab[3, 0, :2] = bfc2

    return jnp.asarray(w_slab), jnp.asarray(b_slab)


def _round_up(x, m):
    return (x + m - 1) // m * m


def cnn_forward(x, params, tile_b=2048):
    """x: (..., DIM) f32 (any leading shape, like the PyTorch view(-1,1,1,dim))."""
    x = jnp.asarray(x, jnp.float32).reshape(-1, DIM)
    B = x.shape[0]
    w_slab, b_slab = build_packed_params(params)

    # Pick a batch tile (multiple of 8), pad B up to a tile multiple.
    tb = min(_round_up(tile_b, 8), _round_up(B, 8))
    Bp = _round_up(B, tb)
    if Bp != B:
        x = jnp.pad(x, ((0, Bp - B), (0, 0)))
    grid = (Bp // tb,)

    out = pl.pallas_call(
        cnn_kernel,
        out_shape=jax.ShapeDtypeStruct((Bp, 2), jnp.float32),
        grid_spec=pltpu.PrefetchScalarGridSpec(
            num_scalar_prefetch=0,
            grid=grid,
            in_specs=[
                pl.BlockSpec((tb, DIM), lambda i: (i, 0)),            # x, batch-tiled
                pl.BlockSpec((4, FEAT, FEAT), lambda i: (0, 0, 0)),   # weights, resident
                pl.BlockSpec((4, 1, FEAT), lambda i: (0, 0, 0)),      # biases,  resident
            ],
            out_specs=pl.BlockSpec((tb, 2), lambda i: (i, 0)),
        ),
        compiler_params=pltpu.CompilerParams(
            dimension_semantics=("parallel",),
        ),
    )(x, w_slab, b_slab)
    return out[:B]


# --------------------------------------------------------------------------- #
# Pure-JAX reference (PyTorch forward in eval mode) for validation.
# --------------------------------------------------------------------------- #
def cnn_reference(x, params):
    x = jnp.asarray(x, jnp.float32).reshape(-1, DIM)
    B = x.shape[0]
    hp = jax.lax.Precision.HIGHEST
    w1 = params["conv1_w"][:, 0, 0, :]                                   # (6, KW)
    b1 = params["conv1_b"]
    w2 = params["conv2_w"][:, :, 0, :]                                   # (6, 6, KW)
    b2 = params["conv2_b"]

    win1 = jnp.stack([x[:, k:k + L1] for k in range(KW)], axis=-1)       # (B, L1, KW)
    y1 = jnp.einsum("bjk,ck->bcj", win1, w1, precision=hp) + b1[None, :, None]
    y1 = jnp.maximum(y1, 0.0)                                            # (B, 6, L1)

    win2 = jnp.stack([y1[:, :, k:k + L2] for k in range(KW)], axis=-1)   # (B, 6, L2, KW)
    y2 = jnp.einsum("bijk,cik->bcj", win2, w2, precision=hp) + b2[None, :, None]
    y2 = jnp.maximum(y2, 0.0)                                            # (B, 6, L2)

    flat = y2.reshape(B, 6 * L2)
    h = jnp.maximum(jnp.dot(flat, params["fc1_w"].T, precision=hp) + params["fc1_b"], 0.0)
    return jnp.dot(h, params["fc2_w"].T, precision=hp) + params["fc2_b"]


if __name__ == "__main__":
    key = jax.random.PRNGKey(0)
    ks = jax.random.split(key, 10)

    params = {
        "conv1_w": 0.2 * jax.random.normal(ks[0], (6, 1, 1, KW), jnp.float32),
        "conv1_b": 0.1 * jax.random.normal(ks[1], (6,), jnp.float32),
        "conv2_w": 0.2 * jax.random.normal(ks[2], (6, 6, 1, KW), jnp.float32),
        "conv2_b": 0.1 * jax.random.normal(ks[3], (6,), jnp.float32),
        "fc1_w":   0.2 * jax.random.normal(ks[4], (2, 6 * L2), jnp.float32),
        "fc1_b":   0.1 * jax.random.normal(ks[5], (2,), jnp.float32),
        "fc2_w":   0.2 * jax.random.normal(ks[6], (2, 2), jnp.float32),
        "fc2_b":   0.1 * jax.random.normal(ks[7], (2,), jnp.float32),
    }

    # Small batch (single grid step).
    x_small = jax.random.normal(ks[8], (8, DIM), jnp.float32)
    out_small = cnn_forward(x_small, params)
    jax.block_until_ready(out_small)
    ref_small = cnn_reference(x_small, params)
    assert out_small.shape == (8, 2)
    assert jnp.allclose(out_small, ref_small, atol=1e-4, rtol=1e-4), (out_small, ref_small)

    # Larger batch exercising the batch grid + tail padding path.
    x_big = jax.random.normal(ks[9], (2500, DIM), jnp.float32)
    out_big = cnn_forward(x_big, params, tile_b=1024)
    jax.block_until_ready(out_big)
    ref_big = cnn_reference(x_big, params)
    assert out_big.shape == (2500, 2)
    assert jnp.allclose(out_big, ref_big, atol=1e-4, rtol=1e-4)

    print("KERNEL_OK")
</pallas_src>

<mosaic_0001>
module attributes {stable_mosaic.version = 11 : i64} {
  func.func @cnn_kernel(%arg0: i32, %arg1: memref<8x7xf32, #tpu.memory_space<vmem>>, %arg2: memref<4x32x32xf32, #tpu.memory_space<vmem>>, %arg3: memref<4x1x32xf32, #tpu.memory_space<vmem>>, %arg4: memref<8x2xf32, #tpu.memory_space<vmem>>) attributes {dimension_semantics = [#tpu.dimension_semantics<parallel>], iteration_bounds = array<i64: 1>, scalar_prefetch = 0 : i64, scratch_operands = 0 : i64, tpu.core_type = #tpu.core_type<tc>, window_params = [{transform_indices = @transform_0, window_bounds = array<i64: 8, 7>}, {pipeline_mode = #tpu.pipeline_mode<synchronous>, transform_indices = @transform_1, window_bounds = array<i64: 4, 32, 32>}, {pipeline_mode = #tpu.pipeline_mode<synchronous>, transform_indices = @transform_2, window_bounds = array<i64: 4, 1, 32>}, {transform_indices = @transform_3, window_bounds = array<i64: 8, 2>}]} {
    %c0 = arith.constant 0 : index
    %c0_0 = arith.constant 0 : index
    %0 = vector.load %arg1[%c0, %c0_0] : memref<8x7xf32, #tpu.memory_space<vmem>>, vector<8x7xf32>
    %c0_1 = arith.constant 0 : index
    %c0_2 = arith.constant 0 : index
    %c0_3 = arith.constant 0 : index
    %1 = vector.load %arg2[%c0_1, %c0_2, %c0_3] : memref<4x32x32xf32, #tpu.memory_space<vmem>>, vector<1x32x32xf32>
    %2 = vector.shape_cast %1 : vector<1x32x32xf32> to vector<32x32xf32>
    %3 = vector.extract_strided_slice %2 {offsets = [0, 0], sizes = [7, 32], strides = [1, 1]} : vector<32x32xf32> to vector<7x32xf32>
    %c1 = arith.constant 1 : index
    %c0_4 = arith.constant 0 : index
    %c0_5 = arith.constant 0 : index
    %4 = vector.load %arg2[%c1, %c0_4, %c0_5] : memref<4x32x32xf32, #tpu.memory_space<vmem>>, vector<1x32x32xf32>
    %5 = vector.shape_cast %4 : vector<1x32x32xf32> to vector<32x32xf32>
    %c2 = arith.constant 2 : index
    %c0_6 = arith.constant 0 : index
    %c0_7 = arith.constant 0 : index
    %6 = vector.load %arg2[%c2, %c0_6, %c0_7] : memref<4x32x32xf32, #tpu.memory_space<vmem>>, vector<1x32x32xf32>
    %7 = vector.shape_cast %6 : vector<1x32x32xf32> to vector<32x32xf32>
    %c3 = arith.constant 3 : index
    %c0_8 = arith.constant 0 : index
    %c0_9 = arith.constant 0 : index
    %8 = vector.load %arg2[%c3, %c0_8, %c0_9] : memref<4x32x32xf32, #tpu.memory_space<vmem>>, vector<1x32x32xf32>
    %9 = vector.shape_cast %8 : vector<1x32x32xf32> to vector<32x32xf32>
    %cst = arith.constant dense<0.000000e+00> : vector<8x32xf32>
    %10 = tpu.matmul %0, %3, %cst {dimension_numbers = #tpu.dot_dimension_numbers<[1], [0], [0], [1], [0, 0, 1, 1], [], []>} : vector<8x7xf32>, vector<7x32xf32>, vector<8x32xf32> -> vector<8x32xf32>
    %c0_10 = arith.constant 0 : index
    %c0_11 = arith.constant 0 : index
    %c0_12 = arith.constant 0 : index
    %11 = vector.load %arg3[%c0_10, %c0_11, %c0_12] : memref<4x1x32xf32, #tpu.memory_space<vmem>>, vector<1x1x32xf32>
    %12 = vector.shape_cast %11 : vector<1x1x32xf32> to vector<1x32xf32>
    %13 = vector.broadcast %12 : vector<1x32xf32> to vector<8x32xf32>
    %14 = arith.addf %10, %13 : vector<8x32xf32>
    %cst_13 = arith.constant 0.000000e+00 : f32
    %15 = vector.broadcast %cst_13 : f32 to vector<8x32xf32>
    %16 = arith.maximumf %14, %15 : vector<8x32xf32>
    %cst_14 = arith.constant dense<0.000000e+00> : vector<8x32xf32>
    %17 = tpu.matmul %16, %5, %cst_14 {dimension_numbers = #tpu.dot_dimension_numbers<[1], [0], [0], [1], [0, 0, 1, 1], [], []>} : vector<8x32xf32>, vector<32x32xf32>, vector<8x32xf32> -> vector<8x32xf32>
    %c1_15 = arith.constant 1 : index
    %c0_16 = arith.constant 0 : index
    %c0_17 = arith.constant 0 : index
    %18 = vector.load %arg3[%c1_15, %c0_16, %c0_17] : memref<4x1x32xf32, #tpu.memory_space<vmem>>, vector<1x1x32xf32>
    %19 = vector.shape_cast %18 : vector<1x1x32xf32> to vector<1x32xf32>
    %20 = vector.broadcast %19 : vector<1x32xf32> to vector<8x32xf32>
    %21 = arith.addf %17, %20 : vector<8x32xf32>
    %cst_18 = arith.constant 0.000000e+00 : f32
    %22 = vector.broadcast %cst_18 : f32 to vector<8x32xf32>
    %23 = arith.maximumf %21, %22 : vector<8x32xf32>
    %cst_19 = arith.constant dense<0.000000e+00> : vector<8x32xf32>
    %24 = tpu.matmul %23, %7, %cst_19 {dimension_numbers = #tpu.dot_dimension_numbers<[1], [0], [0], [1], [0, 0, 1, 1], [], []>} : vector<8x32xf32>, vector<32x32xf32>, vector<8x32xf32> -> vector<8x32xf32>
    %c2_20 = arith.constant 2 : index
    %c0_21 = arith.constant 0 : index
    %c0_22 = arith.constant 0 : index
    %25 = vector.load %arg3[%c2_20, %c0_21, %c0_22] : memref<4x1x32xf32, #tpu.memory_space<vmem>>, vector<1x1x32xf32>
    %26 = vector.shape_cast %25 : vector<1x1x32xf32> to vector<1x32xf32>
    %27 = vector.broadcast %26 : vector<1x32xf32> to vector<8x32xf32>
    %28 = arith.addf %24, %27 : vector<8x32xf32>
    %cst_23 = arith.constant 0.000000e+00 : f32
    %29 = vector.broadcast %cst_23 : f32 to vector<8x32xf32>
    %30 = arith.maximumf %28, %29 : vector<8x32xf32>
    %cst_24 = arith.constant dense<0.000000e+00> : vector<8x32xf32>
    %31 = tpu.matmul %30, %9, %cst_24 {dimension_numbers = #tpu.dot_dimension_numbers<[1], [0], [0], [1], [0, 0, 1, 1], [], []>} : vector<8x32xf32>, vector<32x32xf32>, vector<8x32xf32> -> vector<8x32xf32>
    %c3_25 = arith.constant 3 : index
    %c0_26 = arith.constant 0 : index
    %c0_27 = arith.constant 0 : index
    %32 = vector.load %arg3[%c3_25, %c0_26, %c0_27] : memref<4x1x32xf32, #tpu.memory_space<vmem>>, vector<1x1x32xf32>
    %33 = vector.shape_cast %32 : vector<1x1x32xf32> to vector<1x32xf32>
    %34 = vector.broadcast %33 : vector<1x32xf32> to vector<8x32xf32>
    %35 = arith.addf %31, %34 : vector<8x32xf32>
    %36 = vector.extract_strided_slice %35 {offsets = [0, 0], sizes = [8, 2], strides = [1, 1]} : vector<8x32xf32> to vector<8x2xf32>
    %c0_28 = arith.constant 0 : index
    %c0_29 = arith.constant 0 : index
    %37 = vector.load %arg4[%c0_28, %c0_29] : memref<8x2xf32, #tpu.memory_space<vmem>>, vector<8x2xf32>
    tpu.vector_store %arg4[%c0_28, %c0_29], %36 {strides = array<i32>} : memref<8x2xf32, #tpu.memory_space<vmem>>, vector<8x2xf32>,
    return
  }
  func.func @transform_0(%arg0: i32) -> (i32, i32) {
    %c0_i32 = arith.constant 0 : i32
    %c0_i32_0 = arith.constant 0 : i32
    return %arg0, %c0_i32 : i32, i32
  }
  func.func @transform_1(%arg0: i32) -> (i32, i32, i32) {
    %c0_i32 = arith.constant 0 : i32
    %c0_i32_0 = arith.constant 0 : i32
    %c0_i32_1 = arith.constant 0 : i32
    %c0_i32_2 = arith.constant 0 : i32
    return %c0_i32, %c0_i32_0, %c0_i32_1 : i32, i32, i32
  }
  func.func @transform_2(%arg0: i32) -> (i32, i32, i32) {
    %c0_i32 = arith.constant 0 : i32
    %c0_i32_0 = arith.constant 0 : i32
    %c0_i32_1 = arith.constant 0 : i32
    %c0_i32_2 = arith.constant 0 : i32
    return %c0_i32, %c0_i32_0, %c0_i32_1 : i32, i32, i32
  }
  func.func @transform_3(%arg0: i32) -> (i32, i32) {
    %c0_i32 = arith.constant 0 : i32
    %c0_i32_0 = arith.constant 0 : i32
    return %arg0, %c0_i32 : i32, i32
  }
}

</mosaic_0001>

<bundles_post_ra>
// kernel: tpu_custom_call.1
= control target key start
LH: loop header
LB: loop body
LE: loop exit
PB: predicated region body
PF: predicated region fallthrough
CT: control target
= control target key end

     0   :  { %8 = vsyncpa [#allocation3], 0  ;;  %s595_s0 = inlined_call_operand.hbm [shape: f32[8,7], index: 0, kind: input, shape index: {}]   ;;  %s596_s1 = inlined_call_operand.hbm [shape: f32[4,32,32], index: 1, kind: input, shape index: {}]   ;;  %s597_s2 = inlined_call_operand.hbm [shape: f32[4,1,32], index: 2, kind: input, shape index: {}]   ;;  %s598_s3 = inlined_call_operand.vmem [shape: f32[8,2], index: 3, kind: output, shape index: {}]  }
   0x1   :  { %9 = vsyncpa [#allocation5], 0  ;;  %s547_s12 = smov [#allocation4]  }
   0x2   :  { %s25_s13 = sshll.u32 %s547_s12, 4  ;;  %s26_s13 = int_to_ptr.vmem [resolvable:$true] %s25_s13 }
   0x3   :  { %s491_s14 = scalar_lea.vmem %s26_s13, 2048  ;;  %p496_p1 = scmp.lt.s32.totalorder %s26_s13, %s26_s13 }
   0x4   :  { %p492_p0 = scmp.ne.s32.totalorder %s26_s13, %s491_s14  ;;  %p497_p2 = scmp.lt.s32.totalorder %s491_s14, %s491_s14 }
   0x6   :  { %p498_p3 = por %p497_p2, %p496_p1 }
   0x8   :  { %p499_p4 = pnand %p498_p3, %p492_p0 }
   0xa   :  { %502 = shalt.err (!%p499_p4)
}
   0xb   :  { %s548_s15 = smov 128   ;;  %s549_s16 = smov 8  }
   0xc   :  { %31 = dma.hbm_to_vmem [thread:$0]  %s596_s1, 2048, %s26_s13, [#allocation5], %s548_s15, %s548_s15, %s549_s16  }
   0xd   :  { %s550_s19 = smov [#allocation2]   ;;  %s551_s21 = smov [#allocation6]  }
   0xe   :  { %s16_s20 = sshll.u32 %s550_s19, 4  ;;  %s37_s22 = sshll.u32 %s551_s21, 4  ;;  %s17_s20 = int_to_ptr.vmem [resolvable:$true] %s16_s20  ;;  %s38_s22 = int_to_ptr.vmem [resolvable:$true] %s37_s22 }
   0xf   :  { %s511_s23 = scalar_lea.vmem %s17_s20, 128  ;;  %p516_p6 = scmp.lt.s32.totalorder %s17_s20, %s17_s20 }
  0x10   :  { %p512_p5 = scmp.ne.s32.totalorder %s17_s20, %s511_s23  ;;  %p517_p7 = scmp.lt.s32.totalorder %s511_s23, %s511_s23 }
  0x12   :  { %p518_p8 = por %p517_p7, %p516_p6 }
  0x14   :  { %p519_p9 = pnand %p518_p8, %p512_p5 }
  0x16   :  { %522 = shalt.err (!%p519_p9)
}
  0x17   :  { %19 = dma.hbm_to_vmem [thread:$0]  %s595_s0, 128, %s17_s20, [#allocation3]  }
  0x18   :  { %s531_s26 = scalar_lea.vmem %s38_s22, 64  ;;  %p536_p11 = scmp.lt.s32.totalorder %s38_s22, %s38_s22 }
  0x19   :  { %p532_p10 = scmp.ne.s32.totalorder %s38_s22, %s531_s26  ;;  %p537_p12 = scmp.lt.s32.totalorder %s531_s26, %s531_s26 }
  0x1b   :  { %p538_p13 = por %p537_p12, %p536_p11 }
  0x1d   :  { %p539_p0 = pnand %p538_p13, %p532_p10 }
  0x1f   :  { %542 = shalt.err (!%p539_p0)
}
  0x20   :  { %s552_s1 = smov 16   ;;  %s553_s27 = smov 1  }
  0x21   :  { %43 = dma.hbm_to_vmem [thread:$0]  %s597_s2, 64, %s38_s22, [#allocation5], %s552_s1, %s552_s1, %s553_s27  }
  0x22   :  { %543 = dma.done.wait [#allocation3], 128  }
  0x23   :  { %544 = vsyncadd [#allocation3], 4294967168 }
  0x24   :  { %545 = dma.done.wait [#allocation5], 2112  }
  0x25   :  { %546 = vsyncadd [#allocation5], 4294965184  ;;  %v554_v0 = vmov 0.0   ;;  %vm555_vm0 = vmmov 0   ;;  %vm81_vm1 = vcmask 1046528   ;;  %vm77_vm2 = vcmask 56320  }
  0x26   :  { %436 = vmatprep.subr.mxu0 %v554_v0  ;;  %438 = vmatprep.mubr.msk.f32.mxu0 %vm555_vm0, %v554_v0  ;;  %v54_v1 = vld [vmem:[#allocation4] sm:$0xff]  ;;  %v53_v2 = vld [vmem:[#allocation2] sm:$0xff]  ;;  %v58_v4 = vld [vmem:[#allocation4 + $0x30] sm:$0xff]  ;;  %vm164_vm3 = vcmask 261120   ;;  %vm402_vm4 = vcmask 15360  }
  0x27   :  { %441 = vmatprep.subr.mxu1 %v554_v0  ;;  %449 = vmatprep.mubr.msk.f32.mxu1 %vm555_vm0, %v554_v0  ;;  %v59_v3 = vld [vmem:[#allocation4 + $0x38] sm:$0xff]  ;;  %v57_v5 = vld [vmem:[#allocation4 + $0x28] sm:$0xff]  ;;  %v56_v6 = vld [vmem:[#allocation4 + $0x20] sm:$0xff] }
  0x28   :  { %437 = vmatpush3.msk.msra.mxu0 %vm81_vm1, %v54_v1  ;;  %442 = vmatpush3.msra.mxu1 %v59_v3  ;;  %v64_v7 = vld [vmem:[#allocation4 + $0x58] sm:$0xff]  ;;  %v410_v8 = vld [vmem:[#allocation6] ss:$0 sm:$0xff]  ;;  %v63_v13 = vld [vmem:[#allocation4 + $0x50] sm:$0xff] }
  0x29   :  { %439 = vmatmul.mubr.msk.f32.vlgmr.msra.gmra.mxu0 %vm77_vm2, %v53_v2  ;;  %443 = vmatprep.subr.mxu1 %v554_v0  ;;  %v62_v14 = vld [vmem:[#allocation4 + $0x48] sm:$0xff]  ;;  %v61_v15 = vld [vmem:[#allocation4 + $0x40] sm:$0xff]  ;;  %v69_v16 = vld [vmem:[#allocation4 + $0x78] sm:$0xff] }
  0x2a   :  { %452 = vmatprep.subr.mxu0 %v554_v0  ;;  %460 = vmatprep.mubr.msk.f32.mxu0 %vm555_vm0, %v554_v0  ;;  %v413_v17 = vld [vmem:[#allocation6 + $0x1] ss:$0 sm:$0xff]  ;;  %v68_v22 = vld [vmem:[#allocation4 + $0x70] sm:$0xff]  ;;  %v67_v23 = vld [vmem:[#allocation4 + $0x68] sm:$0xff] }
  0x2b   :  { %444 = vmatpush3.msra.mxu1 %v58_v4  ;;  %453 = vmatpush3.msra.mxu0 %v64_v7  ;;  %v66_v24 = vld [vmem:[#allocation4 + $0x60] sm:$0xff] }
  0x2c   :  { %445 = vmatprep.subr.mxu1 %v554_v0  ;;  %454 = vmatprep.subr.mxu0 %v554_v0  ;;  %v415_v25 = vld [vmem:[#allocation6 + $0x2] ss:$0 sm:$0xff]  ;;  %v417_v30 = vld [vmem:[#allocation6 + $0x3] ss:$0 sm:$0xff] }
  0x2d   :  { %446 = vmatpush3.msra.mxu1 %v57_v5  ;;  %455 = vmatpush3.msra.mxu0 %v63_v13 }
  0x2e   :  { %447 = vmatprep.subr.mxu1 %v554_v0  ;;  %456 = vmatprep.subr.mxu0 %v554_v0 }
  0x2f   :  { %448 = vmatpush3.msra.mxu1 %v56_v6  ;;  %457 = vmatpush3.msra.mxu0 %v62_v14 }
  0x30   :  { %463 = vmatprep.subr.mxu1 %v554_v0  ;;  %458 = vmatprep.subr.mxu0 %v554_v0 }
  0x31   :  { %459 = vmatpush3.msra.mxu0 %v61_v15 }
  0xe9   :  { %v151_v9 = vpop.f32.mrf.mxu0 }
  0xea   :  { %v152_v10 = vadd.f32 %v410_v8, %v151_v9 }
  0xeb   :  { %v440_v11 = vpop.f32.mrf.mxu0 }
  0xec   :  { %v155_v12 = vmax.f32 %v152_v10, 0.0 }
  0xee   :  { %450 = vmatmul.mubr.msk.f32.vlgmr.msra.gmra.mxu1 %vm164_vm3, %v155_v12 }
  0xef   :  { %471 = vmatprep.mubr.msk.f32.mxu1 %vm555_vm0, %v554_v0  ;;  %464 = vmatpush3.msra.mxu1 %v69_v16 }
  0xf0   :  { %465 = vmatprep.subr.mxu1 %v554_v0 }
  0xf1   :  { %466 = vmatpush3.msra.mxu1 %v68_v22 }
  0xf2   :  { %467 = vmatprep.subr.mxu1 %v554_v0 }
  0xf3   :  { %468 = vmatpush3.msra.mxu1 %v67_v23 }
  0xf4   :  { %469 = vmatprep.subr.mxu1 %v554_v0 }
  0xf5   :  { %470 = vmatpush3.msra.mxu1 %v66_v24 }
 0x1ae   :  { %v234_v18 = vpop.f32.mrf.mxu1 }
 0x1af   :  { %v235_v19 = vadd.f32 %v413_v17, %v234_v18 }
 0x1b0   :  { %v451_v20 = vpop.f32.mrf.mxu1 }
 0x1b1   :  { %v238_v21 = vmax.f32 %v235_v19, 0.0 }
 0x1b3   :  { %461 = vmatmul.mubr.msk.f32.vlgmr.msra.gmra.mxu0 %vm164_vm3, %v238_v21 }
 0x273   :  { %v316_v26 = vpop.f32.mrf.mxu0 }
 0x274   :  { %v317_v27 = vadd.f32 %v415_v25, %v316_v26 }
 0x275   :  { %v462_v28 = vpop.f32.mrf.mxu0 }
 0x276   :  { %v320_v29 = vmax.f32 %v317_v27, 0.0 }
 0x278   :  { %472 = vmatmul.mubr.msk.f32.vlgmr.msra.gmra.mxu1 %vm164_vm3, %v320_v29 }
 0x338   :  { %v398_v31 = vpop.f32.mrf.mxu1 }
 0x339   :  { %v399_v32 = vadd.f32 %v417_v30, %v398_v31 }
 0x33a   :  { %v473_v33 = vpop.f32.mrf.mxu1 }
 0x33b   :  { %403 = vst.msk [vmem:[%s598_s3] sm:$0xff] %vm402_vm4, %v399_v32 }
 0x33c   :  { %408 = vsyncpa [#allocation3], 1 }
 0x33d   :  { %409 = vsyncpa [#allocation5], 1 }

</bundles_post_ra>
